<compile_context>
chip_gen: v7x
topology: tpu7x:2x2x1
jax: 0.10.0
libtpu: 0.0.40
codegen_flags: <defaults>
</compile_context>

<pallas_src>
import functools

import jax
import jax.numpy as jnp
import numpy as np
from jax.experimental import pallas as pl
from jax.experimental.pallas import tpu as pltpu


# -----------------------------------------------------------------------------
# Small helpers
# -----------------------------------------------------------------------------
def _round_up(x, m):
    return (x + m - 1) // m * m


def _vmem_capacity_bytes():
    """Physical per-core VMEM; fall back to the smallest current gen (v7x, 64 MiB)."""
    try:
        info = pltpu.get_tpu_info()
        for attr in ("vmem_capacity_bytes", "vmem_bytes", "vmem_size_bytes"):
            v = getattr(info, attr, None)
            if v:
                return int(v)
    except Exception:
        pass
    return 64 << 20


# -----------------------------------------------------------------------------
# Fused kernel: all L GCN layers in one pallas_call (A_hat resident in VMEM)
# -----------------------------------------------------------------------------
def _fused_layers_kernel(a_ref, h0_ref, w_ref, b_ref, wres_ref, res_ref, h_scr):
    """Grid step = one GCN layer.

    a_ref    : (N, N)     bf16  normalized adjacency (constant index -> DMA'd once)
    h0_ref   : (N, Hp)    bf16  initial node features (constant index)
    w_ref    : (1,Hp,Hp)  bf16  BN-folded conv weight for layer l
    b_ref    : (1,1,Hp)   f32   BN-folded conv bias for layer l
    wres_ref : (1,Hp,Hp)  bf16  per-layer slice of the residual-head weight
    res_ref  : (N, Hp)    f32   residual-head accumulator (grid-resident output)
    h_scr    : (N, Hp)    f32   node features carried across layers (VMEM scratch)
    """
    l = pl.program_id(0)

    @pl.when(l == 0)
    def _():
        h_scr[...] = h0_ref[...].astype(jnp.float32)
        res_ref[...] = jnp.zeros_like(res_ref)

    h = h_scr[...]
    # xw = h @ W'   (bf16 MXU operands, f32 accumulation)
    xw = jnp.dot(h.astype(jnp.bfloat16), w_ref[0],
                 preferred_element_type=jnp.float32)
    # conv = A_hat @ xw + b'
    conv = jnp.dot(a_ref[...], xw.astype(jnp.bfloat16),
                   preferred_element_type=jnp.float32) + b_ref[0]
    # BN folded into W'/b'; Dropout identity in eval mode; ReLU + residual add.
    h_new = h + jnp.maximum(conv, 0.0)
    h_scr[...] = h_new
    # Residual head: res += h_l @ W_res[l]  (replaces concat + one big matmul)
    res_ref[...] += jnp.dot(h_new.astype(jnp.bfloat16), wres_ref[0],
                            preferred_element_type=jnp.float32)


# -----------------------------------------------------------------------------
# Row-tiled fallback: one GCN layer per call, A_hat streamed as (tm, N) strips
# -----------------------------------------------------------------------------
def _gcn_layer_tiled_kernel(a_ref, xw_ref, h_ref, b_ref, wres_ref, racc_ref,
                            h_out_ref, racc_out_ref):
    """One GCN layer for a tm-row tile of nodes; xw = h @ W' precomputed outside.

    a_ref    : (tm, N)  bf16  row strip of A_hat
    xw_ref   : (N, Hp)  bf16  h @ W' for the whole graph (constant index, resident)
    h_ref    : (tm, Hp) bf16  node-feature row tile (for the residual add only)
    b_ref    : (1, Hp)  f32   BN-folded conv bias
    wres_ref : (Hp, Hp) bf16  per-layer residual-head weight
    racc_ref : (tm, Hp) f32   residual-head accumulator row tile (aliased in place)
    """
    conv = jnp.dot(a_ref[...], xw_ref[...],
                   preferred_element_type=jnp.float32) + b_ref[...]
    h_new = h_ref[...].astype(jnp.float32) + jnp.maximum(conv, 0.0)
    h_out_ref[...] = h_new.astype(jnp.bfloat16)
    racc_out_ref[...] = racc_ref[...] + jnp.dot(
        h_new.astype(jnp.bfloat16), wres_ref[...],
        preferred_element_type=jnp.float32)


# -----------------------------------------------------------------------------
# Path runners
# -----------------------------------------------------------------------------
def _run_fused(a_bf16, h0, w_conv_p, b_conv_p, w_res_p, L, N, Hp, vmem_limit):
    const2 = lambda l: (0, 0)
    per_layer3 = lambda l: (l, 0, 0)
    cost = pl.CostEstimate(
        flops=L * (4 * N * Hp * Hp + 2 * N * N * Hp),
        transcendentals=0,
        bytes_accessed=2 * N * N + 2 * N * Hp + 4 * N * Hp
                       + L * (4 * Hp * Hp + 4 * Hp))
    return pl.pallas_call(
        _fused_layers_kernel,
        out_shape=jax.ShapeDtypeStruct((N, Hp), jnp.float32),
        grid=(L,),
        in_specs=[
            pl.BlockSpec((N, N), const2),                  # A_hat (resident)
            pl.BlockSpec((N, Hp), const2),                 # h0 (resident)
            pl.BlockSpec((1, Hp, Hp), per_layer3),         # W'_l
            pl.BlockSpec((1, 1, Hp), per_layer3),          # b'_l
            pl.BlockSpec((1, Hp, Hp), per_layer3),         # W_res[l]
        ],
        out_specs=pl.BlockSpec((N, Hp), const2),           # res accumulator
        scratch_shapes=[pltpu.VMEM((N, Hp), jnp.float32)],  # h carried across layers
        compiler_params=pltpu.CompilerParams(
            dimension_semantics=("arbitrary",),
            vmem_limit_bytes=vmem_limit),
        cost_estimate=cost,
    )(a_bf16, h0.astype(jnp.bfloat16), w_conv_p, b_conv_p, w_res_p)


def _run_tiled(a_bf16, h0, w_conv_p, b_conv_p, w_res_p, L, N, Hp, vmem_limit,
               block_rows):
    tm = min(block_rows, N)
    assert tm % 16 == 0 and N % tm == 0, (
        "row tile must be a multiple of 16 (bf16 sublane tile) and divide N")
    grid = (N // tm,)
    row_hp = pl.BlockSpec((tm, Hp), lambda i: (i, 0))
    in_specs = [
        pl.BlockSpec((tm, N), lambda i: (i, 0)),    # A_hat row strip
        pl.BlockSpec((N, Hp), lambda i: (0, 0)),    # xw (resident across grid)
        row_hp,                                     # h row tile
        pl.BlockSpec((1, Hp), lambda i: (0, 0)),    # BN-folded bias
        pl.BlockSpec((Hp, Hp), lambda i: (0, 0)),   # W_res[l]
        row_hp,                                     # res_acc row tile (aliased)
    ]
    out_specs = (row_hp, row_hp)
    cost = pl.CostEstimate(
        flops=2 * N * N * Hp + 2 * N * Hp * Hp,
        transcendentals=0,
        bytes_accessed=2 * N * N + 2 * N * Hp + 2 * N * Hp + 10 * N * Hp
                       + 2 * Hp * Hp + 4 * Hp)
    cparams = pltpu.CompilerParams(dimension_semantics=("parallel",),
                                   vmem_limit_bytes=vmem_limit)

    h_bf = h0.astype(jnp.bfloat16)
    res_acc = jnp.zeros((N, Hp), jnp.float32)
    for l in range(L):
        # xw = h @ W'_l hoisted out of the row-tiled kernel (computed once per layer).
        xw = jnp.dot(h_bf, w_conv_p[l],
                     preferred_element_type=jnp.float32).astype(jnp.bfloat16)
        h_bf, res_acc = pl.pallas_call(
            _gcn_layer_tiled_kernel,
            out_shape=(jax.ShapeDtypeStruct((N, Hp), jnp.bfloat16),
                       jax.ShapeDtypeStruct((N, Hp), jnp.float32)),
            grid=grid,
            in_specs=in_specs,
            out_specs=out_specs,
            input_output_aliases={5: 1},            # res_acc accumulated in place
            compiler_params=cparams,
            cost_estimate=cost,
        )(a_bf16, xw, h_bf, b_conv_p[l], w_res_p[l], res_acc)
    return res_acc


# -----------------------------------------------------------------------------
# Forward wrapper
# -----------------------------------------------------------------------------
def dense_gnn_forward(x, a_hat, pool, params, *, block_rows=512, fuse_layers=None):
    """DenseGNN forward pass (eval mode) with Pallas kernels for the GNN body."""
    N, _ = x.shape
    H = params["w_in"].shape[1]
    L = params["w_conv"].shape[0]
    Hp = _round_up(max(H, 128), 128)          # lane-dense hidden dim for the kernels

    # ---- parameter prep (traced once): fold BN, pad H -> Hp, cast MXU operands --
    eps = 1e-5
    scale = params["gamma"] * jax.lax.rsqrt(params["rv"] + eps)               # (L,1,H)
    w_conv_f = params["w_conv"] * scale                                       # fold BN into W
    b_conv_f = (params["b_conv"] - params["rm"]) * scale + params["beta"]     # fold BN into b
    w_res_l = params["w_res"].reshape(L, H, H)                                # per-layer W_res

    pad_hh = ((0, 0), (0, Hp - H), (0, Hp - H))
    pad_1h = ((0, 0), (0, 0), (0, Hp - H))
    w_conv_p = jnp.pad(w_conv_f, pad_hh).astype(jnp.bfloat16)                 # (L,Hp,Hp)
    b_conv_p = jnp.pad(b_conv_f, pad_1h)                                      # (L,1,Hp) f32
    w_res_p = jnp.pad(w_res_l, pad_hh).astype(jnp.bfloat16)                   # (L,Hp,Hp)
    w_in_p = jnp.pad(params["w_in"], ((0, 0), (0, Hp - H)))                   # (F,Hp)
    b_in_p = jnp.pad(params["b_in"], ((0, 0), (0, Hp - H)))                   # (1,Hp)
    a_bf16 = a_hat.astype(jnp.bfloat16)                                       # halve A_hat traffic

    # ---- initial Linear + ReLU in plain JAX (tiny, F=11 is lane-hostile) --------
    h0 = jnp.maximum(
        jnp.dot(x, w_in_p, preferred_element_type=jnp.float32) + b_in_p, 0.0)

    # ---- VMEM budget / path selection --------------------------------------------
    vmem_phys = _vmem_capacity_bytes()
    vmem_limit = (40 << 20) if vmem_phys <= (64 << 20) else (96 << 20)
    # fused working set: double-buffered bf16 A_hat + f32 h scratch + f32 res block
    fused_bytes = 4 * N * N + 12 * N * Hp + 12 * Hp * Hp
    if fuse_layers is None:
        fuse_layers = fused_bytes <= (vmem_limit * 3) // 4

    if fuse_layers:
        res_p = _run_fused(a_bf16, h0, w_conv_p, b_conv_p, w_res_p,
                           L, N, Hp, vmem_limit)
    else:
        res_p = _run_tiled(a_bf16, h0, w_conv_p, b_conv_p, w_res_p,
                           L, N, Hp, vmem_limit, block_rows)

    # ---- tiny epilogue in plain JAX (output_dim=1 is lane-hostile in-kernel) -----
    res = res_p[:, :H] + params["b_res"]
    pooled = pool @ res                                        # global_mean_pool
    h1 = jnp.maximum(pooled @ params["w_o1"] + params["b_o1"], 0.0)
    out = h1 @ params["w_o2"] + params["b_o2"]
    return out.reshape(-1)


# -----------------------------------------------------------------------------
# Pure-JAX reference (f32, original un-folded semantics) for a sanity check
# -----------------------------------------------------------------------------
def _reference_forward(x, a_hat, pool, params):
    eps = 1e-5
    h = jnp.maximum(x @ params["w_in"] + params["b_in"], 0.0)
    outs = []
    for l in range(params["w_conv"].shape[0]):
        conv = a_hat @ (h @ params["w_conv"][l]) + params["b_conv"][l]
        bn = (conv - params["rm"][l]) / jnp.sqrt(params["rv"][l] + eps) \
             * params["gamma"][l] + params["beta"][l]
        h = h + jnp.maximum(bn, 0.0)
        outs.append(h)
    cat = jnp.concatenate(outs, axis=-1)
    res = cat @ params["w_res"] + params["b_res"]
    pooled = pool @ res
    h1 = jnp.maximum(pooled @ params["w_o1"] + params["b_o1"], 0.0)
    return (h1 @ params["w_o2"] + params["b_o2"]).reshape(-1)


# -----------------------------------------------------------------------------
# Parameter / graph construction
# -----------------------------------------------------------------------------
def make_params(key, num_features, hidden_dim, output_dim, num_layers):
    ks = jax.random.split(key, 16)
    s = 0.1
    H = hidden_dim
    return {
        "w_in":   s * jax.random.normal(ks[0], (num_features, H), jnp.float32),
        "b_in":   s * jax.random.normal(ks[1], (1, H), jnp.float32),
        "w_conv": s * jax.random.normal(ks[2], (num_layers, H, H), jnp.float32),
        "b_conv": s * jax.random.normal(ks[3], (num_layers, 1, H), jnp.float32),
        "gamma":  1.0 + s * jax.random.normal(ks[4], (num_layers, 1, H), jnp.float32),
        "beta":   s * jax.random.normal(ks[5], (num_layers, 1, H), jnp.float32),
        "rm":     jnp.zeros((num_layers, 1, H), jnp.float32),   # BN running mean
        "rv":     jnp.ones((num_layers, 1, H), jnp.float32),    # BN running var
        "w_res":  s * jax.random.normal(ks[6], (H * num_layers, H), jnp.float32),
        "b_res":  s * jax.random.normal(ks[7], (1, H), jnp.float32),
        "w_o1":   s * jax.random.normal(ks[8], (H, H // 2), jnp.float32),
        "b_o1":   s * jax.random.normal(ks[9], (1, H // 2), jnp.float32),
        "w_o2":   s * jax.random.normal(ks[10], (H // 2, output_dim), jnp.float32),
        "b_o2":   s * jax.random.normal(ks[11], (1, output_dim), jnp.float32),
    }


def build_graph_tensors(key, num_nodes, num_features, batch_ids, edge_index):
    """Node features, dense GCN-normalized adjacency, mean-pool matrix."""
    x = jax.random.normal(key, (num_nodes, num_features), jnp.float32)

    src, dst = edge_index
    adj = jnp.zeros((num_nodes, num_nodes), jnp.float32).at[dst, src].add(1.0)
    adj = adj + jnp.eye(num_nodes, dtype=jnp.float32)            # add self loops
    deg = adj.sum(axis=1)
    dinv = jax.lax.rsqrt(deg)
    a_hat = dinv[:, None] * adj * dinv[None, :]                  # D^-1/2 (A+I) D^-1/2

    num_graphs = int(np.max(batch_ids)) + 1
    batch = jnp.asarray(batch_ids, jnp.int32)
    onehot = (batch[None, :] == jnp.arange(num_graphs, dtype=jnp.int32)[:, None]
              ).astype(jnp.float32)
    pool = onehot / onehot.sum(axis=1, keepdims=True)            # (G, N) mean pool
    return x, a_hat, pool


if __name__ == "__main__":
    num_features = 11
    hidden_dim = 32
    output_dim = 1
    num_layers = 3
    graphs = 4
    nodes_per_graph = 8
    num_nodes = graphs * nodes_per_graph                         # 32 nodes total

    # Four graphs of 8 nodes each; bidirectional chain edges within each graph.
    batch_ids = np.repeat(np.arange(graphs, dtype=np.int32), nodes_per_graph)
    src_list, dst_list = [], []
    for g in range(graphs):
        base = g * nodes_per_graph
        for i in range(nodes_per_graph - 1):
            src_list += [base + i, base + i + 1]
            dst_list += [base + i + 1, base + i]
    edge_index = (np.array(src_list, np.int32), np.array(dst_list, np.int32))

    key = jax.random.PRNGKey(0)
    k_x, k_p = jax.random.split(key)
    x, a_hat, pool = build_graph_tensors(k_x, num_nodes, num_features,
                                         batch_ids, edge_index)
    params = make_params(k_p, num_features, hidden_dim, output_dim, num_layers)

    ref = jax.block_until_ready(_reference_forward(x, a_hat, pool, params))

    # Main path: all layers fused in one pallas_call (A_hat resident in VMEM).
    fwd_fused = jax.jit(functools.partial(dense_gnn_forward, fuse_layers=True))
    out_fused = jax.block_until_ready(fwd_fused(x, a_hat, pool, params))
    # bf16 MXU operands -> loosened tolerance vs the f32 reference.
    np.testing.assert_allclose(np.asarray(out_fused), np.asarray(ref),
                               rtol=2e-2, atol=2e-2)

    # Large-N fallback path: row-tiled per-layer kernels (forced here for coverage).
    fwd_tiled = jax.jit(functools.partial(dense_gnn_forward,
                                          fuse_layers=False, block_rows=16))
    out_tiled = jax.block_until_ready(fwd_tiled(x, a_hat, pool, params))
    np.testing.assert_allclose(np.asarray(out_tiled), np.asarray(ref),
                               rtol=2e-2, atol=2e-2)

    print("KERNEL_OK")
</pallas_src>

<mosaic_0001>
module attributes {stable_mosaic.version = 11 : i64} {
  func.func @_fused_layers_kernel(%arg0: i32, %arg1: memref<32x32xbf16, #tpu.memory_space<vmem>>, %arg2: memref<32x128xbf16, #tpu.memory_space<vmem>>, %arg3: memref<1x128x128xbf16, #tpu.memory_space<vmem>>, %arg4: memref<1x1x128xf32, #tpu.memory_space<vmem>>, %arg5: memref<1x128x128xbf16, #tpu.memory_space<vmem>>, %arg6: memref<32x128xf32, #tpu.memory_space<vmem>>, %arg7: memref<32x128xf32, #tpu.memory_space<vmem>>) attributes {dimension_semantics = [#tpu.dimension_semantics<arbitrary>], iteration_bounds = array<i64: 3>, scalar_prefetch = 0 : i64, scratch_operands = 1 : i64, tpu.core_type = #tpu.core_type<tc>, window_params = [{pipeline_mode = #tpu.pipeline_mode<synchronous>, transform_indices = @transform_0, window_bounds = array<i64: 32, 32>}, {pipeline_mode = #tpu.pipeline_mode<synchronous>, transform_indices = @transform_1, window_bounds = array<i64: 32, 128>}, {transform_indices = @transform_2, window_bounds = array<i64: 1, 128, 128>}, {transform_indices = @transform_3, window_bounds = array<i64: 1, 1, 128>}, {transform_indices = @transform_4, window_bounds = array<i64: 1, 128, 128>}, {pipeline_mode = #tpu.pipeline_mode<synchronous>, transform_indices = @transform_5, window_bounds = array<i64: 32, 128>}]} {
    %c0_i32 = arith.constant 0 : i32
    %0 = arith.cmpi eq, %arg0, %c0_i32 : i32
    %1 = arith.extui %0 : i1 to i32
    %c0_i32_0 = arith.constant 0 : i32
    %2 = arith.cmpi ne, %1, %c0_i32_0 : i32
    scf.if %2 {
      %c0_22 = arith.constant 0 : index
      %c0_23 = arith.constant 0 : index
      %26 = vector.load %arg2[%c0_22, %c0_23] : memref<32x128xbf16, #tpu.memory_space<vmem>>, vector<32x128xbf16>
      %27 = arith.extf %26 : vector<32x128xbf16> to vector<32x128xf32>
      %c0_24 = arith.constant 0 : index
      %c0_25 = arith.constant 0 : index
      %28 = vector.load %arg7[%c0_24, %c0_25] : memref<32x128xf32, #tpu.memory_space<vmem>>, vector<32x128xf32>
      tpu.vector_store %arg7[%c0_24, %c0_25], %27 {strides = array<i32>} : memref<32x128xf32, #tpu.memory_space<vmem>>, vector<32x128xf32>,
      %cst_26 = arith.constant 0.000000e+00 : f32
      %29 = vector.broadcast %cst_26 : f32 to vector<32x128xf32>
      %c0_27 = arith.constant 0 : index
      %c0_28 = arith.constant 0 : index
      %30 = vector.load %arg6[%c0_27, %c0_28] : memref<32x128xf32, #tpu.memory_space<vmem>>, vector<32x128xf32>
      tpu.vector_store %arg6[%c0_27, %c0_28], %29 {strides = array<i32>} : memref<32x128xf32, #tpu.memory_space<vmem>>, vector<32x128xf32>,
    } else {
    }
    %c0 = arith.constant 0 : index
    %c0_1 = arith.constant 0 : index
    %3 = vector.load %arg7[%c0, %c0_1] : memref<32x128xf32, #tpu.memory_space<vmem>>, vector<32x128xf32>
    %4 = arith.truncf %3 : vector<32x128xf32> to vector<32x128xbf16>
    %c0_2 = arith.constant 0 : index
    %c0_3 = arith.constant 0 : index
    %c0_4 = arith.constant 0 : index
    %5 = vector.load %arg3[%c0_2, %c0_3, %c0_4] : memref<1x128x128xbf16, #tpu.memory_space<vmem>>, vector<1x128x128xbf16>
    %6 = vector.shape_cast %5 : vector<1x128x128xbf16> to vector<128x128xbf16>
    %cst = arith.constant dense<0.000000e+00> : vector<32x128xf32>
    %7 = tpu.matmul %4, %6, %cst {dimension_numbers = #tpu.dot_dimension_numbers<[1], [0], [0], [1], [0, 0, 1, 1], [], []>} : vector<32x128xbf16>, vector<128x128xbf16>, vector<32x128xf32> -> vector<32x128xf32>
    %c0_5 = arith.constant 0 : index
    %c0_6 = arith.constant 0 : index
    %8 = vector.load %arg1[%c0_5, %c0_6] : memref<32x32xbf16, #tpu.memory_space<vmem>>, vector<32x32xbf16>
    %9 = arith.truncf %7 : vector<32x128xf32> to vector<32x128xbf16>
    %cst_7 = arith.constant dense<0.000000e+00> : vector<32x128xf32>
    %10 = tpu.matmul %8, %9, %cst_7 {dimension_numbers = #tpu.dot_dimension_numbers<[1], [0], [0], [1], [0, 0, 1, 1], [], []>} : vector<32x32xbf16>, vector<32x128xbf16>, vector<32x128xf32> -> vector<32x128xf32>
    %c0_8 = arith.constant 0 : index
    %c0_9 = arith.constant 0 : index
    %c0_10 = arith.constant 0 : index
    %11 = vector.load %arg4[%c0_8, %c0_9, %c0_10] : memref<1x1x128xf32, #tpu.memory_space<vmem>>, vector<1x1x128xf32>
    %12 = vector.shape_cast %11 : vector<1x1x128xf32> to vector<1x128xf32>
    %13 = vector.broadcast %12 : vector<1x128xf32> to vector<32x128xf32>
    %14 = arith.addf %10, %13 : vector<32x128xf32>
    %cst_11 = arith.constant 0.000000e+00 : f32
    %15 = vector.broadcast %cst_11 : f32 to vector<32x128xf32>
    %16 = arith.maximumf %14, %15 : vector<32x128xf32>
    %17 = arith.addf %3, %16 : vector<32x128xf32>
    %c0_12 = arith.constant 0 : index
    %c0_13 = arith.constant 0 : index
    %18 = vector.load %arg7[%c0_12, %c0_13] : memref<32x128xf32, #tpu.memory_space<vmem>>, vector<32x128xf32>
    tpu.vector_store %arg7[%c0_12, %c0_13], %17 {strides = array<i32>} : memref<32x128xf32, #tpu.memory_space<vmem>>, vector<32x128xf32>,
    %c0_14 = arith.constant 0 : index
    %c0_15 = arith.constant 0 : index
    %19 = vector.load %arg6[%c0_14, %c0_15] : memref<32x128xf32, #tpu.memory_space<vmem>>, vector<32x128xf32>
    %20 = arith.truncf %17 : vector<32x128xf32> to vector<32x128xbf16>
    %c0_16 = arith.constant 0 : index
    %c0_17 = arith.constant 0 : index
    %c0_18 = arith.constant 0 : index
    %21 = vector.load %arg5[%c0_16, %c0_17, %c0_18] : memref<1x128x128xbf16, #tpu.memory_space<vmem>>, vector<1x128x128xbf16>
    %22 = vector.shape_cast %21 : vector<1x128x128xbf16> to vector<128x128xbf16>
    %cst_19 = arith.constant dense<0.000000e+00> : vector<32x128xf32>
    %23 = tpu.matmul %20, %22, %cst_19 {dimension_numbers = #tpu.dot_dimension_numbers<[1], [0], [0], [1], [0, 0, 1, 1], [], []>} : vector<32x128xbf16>, vector<128x128xbf16>, vector<32x128xf32> -> vector<32x128xf32>
    %24 = arith.addf %19, %23 : vector<32x128xf32>
    %c0_20 = arith.constant 0 : index
    %c0_21 = arith.constant 0 : index
    %25 = vector.load %arg6[%c0_20, %c0_21] : memref<32x128xf32, #tpu.memory_space<vmem>>, vector<32x128xf32>
    tpu.vector_store %arg6[%c0_20, %c0_21], %24 {strides = array<i32>} : memref<32x128xf32, #tpu.memory_space<vmem>>, vector<32x128xf32>,
    return
  }
  func.func @transform_0(%arg0: i32) -> (i32, i32) {
    %c0_i32 = arith.constant 0 : i32
    %c0_i32_0 = arith.constant 0 : i32
    %c0_i32_1 = arith.constant 0 : i32
    return %c0_i32, %c0_i32_0 : i32, i32
  }
  func.func @transform_1(%arg0: i32) -> (i32, i32) {
    %c0_i32 = arith.constant 0 : i32
    %c0_i32_0 = arith.constant 0 : i32
    %c0_i32_1 = arith.constant 0 : i32
    return %c0_i32, %c0_i32_0 : i32, i32
  }
  func.func @transform_2(%arg0: i32) -> (i32, i32, i32) {
    %c0_i32 = arith.constant 0 : i32
    %c0_i32_0 = arith.constant 0 : i32
    %c0_i32_1 = arith.constant 0 : i32
    return %arg0, %c0_i32, %c0_i32_0 : i32, i32, i32
  }
  func.func @transform_3(%arg0: i32) -> (i32, i32, i32) {
    %c0_i32 = arith.constant 0 : i32
    %c0_i32_0 = arith.constant 0 : i32
    %c0_i32_1 = arith.constant 0 : i32
    return %arg0, %c0_i32, %c0_i32_0 : i32, i32, i32
  }
  func.func @transform_4(%arg0: i32) -> (i32, i32, i32) {
    %c0_i32 = arith.constant 0 : i32
    %c0_i32_0 = arith.constant 0 : i32
    %c0_i32_1 = arith.constant 0 : i32
    return %arg0, %c0_i32, %c0_i32_0 : i32, i32, i32
  }
  func.func @transform_5(%arg0: i32) -> (i32, i32) {
    %c0_i32 = arith.constant 0 : i32
    %c0_i32_0 = arith.constant 0 : i32
    %c0_i32_1 = arith.constant 0 : i32
    return %c0_i32, %c0_i32_0 : i32, i32
  }
}

</mosaic_0001>

<bundles_post_ra>
// kernel: dense_gnn_forward.1
= control target key start
LH: loop header
LB: loop body
LE: loop exit
PB: predicated region body
PF: predicated region fallthrough
CT: control target
= control target key end

     0   :  { %s832_s18 = smov 0   ;;  %s939_s0 = inlined_call_operand.vmem [shape: bf16[32,32], index: 0, kind: input, shape index: {}]   ;;  %s940_s1 = inlined_call_operand.vmem [shape: bf16[32,128], index: 1, kind: input, shape index: {}]   ;;  %s941_s2 = inlined_call_operand.vmem [shape: bf16[3,128,128], index: 2, kind: input, shape index: {}]   ;;  %s942_s3 = inlined_call_operand.vmem [shape: f32[3,1,128], index: 3, kind: input, shape index: {}]   ;;  %s943_s4 = inlined_call_operand.vmem [shape: bf16[3,128,128], index: 4, kind: input, shape index: {}]   ;;  %s944_s5 = inlined_call_operand.vmem [shape: f32[32,128], index: 5, kind: output, shape index: {}]  }
   0x1 LB: > { %s651_s19 = sadd.s32 4294967295, %s799_s18   ;;  %p654_p0 = scmp.ge.s32.totalorder %s799_s18, 1  ;;  %s799_s18 = sphi %s832_s18, %s15_s18  }
   0x2   : > { %p200_p1 = scmp.lt.s32.totalorder %s799_s18, 4 }
   0x4   : > { %p201_p2 = pnand %p654_p0, %p200_p1 }
   0x5   : > { %p231_p3 = scmp.lt.s32.totalorder (!%p201_p2), %s651_s19, 2  ;;  %p659_p4 = scmp.ne.s32.totalorder (!%p201_p2), %s651_s19, 0 }
   0x6   : > { %204 = sbr.rel (%p201_p2) target bundleno = 721 (0x2d1), region = 40 }
   0xd   : > { %s840_s20 = scalar_select %p231_p3, %s651_s19, 2 }
   0xe   : > { %248 = sbr.rel (%p659_p4) target bundleno = 21 (0x15), region = 44  ;;  %v686_v0 = vld [vmem:[%s940_s1] sm:$0xff] (!%p659_p4)   ;;  %v693_v1 = vld [vmem:[%s940_s1 + $0x8] sm:$0xff] (!%p659_p4)   ;;  %v801_v6 = vmov (!%p659_p4), 0.0  }
   0xf   : > { %s683_s21 = sshll.u32 %s840_s20, 6  ;;  %s238_s24 = scalar_lea.vmem %s942_s3, %s840_s20  ;;  %v687_v2 = vunpack.c.l.bf16 (!%p659_p4), %v686_v0  ;;  %v688_v3 = vunpack.c.h.bf16 (!%p659_p4), %v686_v0  ;;  %v691_v4 = vunpack.c.l.bf16 (!%p659_p4), %v693_v1  ;;  %v692_v5 = vunpack.c.h.bf16 (!%p659_p4), %v693_v1  ;;  %261 = vst [vmem:[%s944_s5] sm:$0xff] (!%p659_p4), %v801_v6  ;;  %262 = vst [vmem:[%s944_s5 + $0x8] sm:$0xff] (!%p659_p4), %v801_v6 }
  0x10   : > { %s850_s27 = scalar_lea.vmem %s941_s2, %s683_s21  ;;  %s855_s30 = scalar_lea.vmem %s943_s4, %s683_s21  ;;  %263 = vst [vmem:[%s944_s5 + $0x10] sm:$0xff] (!%p659_p4), %v801_v6  ;;  %264 = vst [vmem:[%s944_s5 + $0x18] sm:$0xff] (!%p659_p4), %v801_v6 }
  0x11   : > { %257 = vst [vmem:[#allocation2] sm:$0xff] (!%p659_p4), %v687_v2  ;;  %258 = vst [vmem:[#allocation2 + $0x8] sm:$0xff] (!%p659_p4), %v688_v3 }
  0x12   : > { %259 = vst [vmem:[#allocation2 + $0x10] sm:$0xff] (!%p659_p4), %v691_v4  ;;  %260 = vst [vmem:[#allocation2 + $0x18] sm:$0xff] (!%p659_p4), %v692_v5 }
  0x15 PF: > { %v775_v7 = vld [vmem:[%s850_s27] sm:$0xff]   ;;  %v776_v8 = vld [vmem:[%s850_s27 + $0x8] sm:$0xff]   ;;  %v777_v9 = vld [vmem:[%s850_s27 + $0x10] sm:$0xff]   ;;  %vm407_vm0 = vcmask 261120  }
  0x16   : > { %718 = vmatprep.subr.bf16.mxu0 %v775_v7  ;;  %v778_v10 = vld [vmem:[%s850_s27 + $0x18] sm:$0xff]   ;;  %v779_v14 = vld [vmem:[%s850_s27 + $0x20] sm:$0xff]   ;;  %v780_v15 = vld [vmem:[%s850_s27 + $0x28] sm:$0xff]  }
  0x17   : > { %719 = vmatpush3.bf16.msra.mxu0 %v775_v7  ;;  %v781_v16 = vld [vmem:[%s850_s27 + $0x30] sm:$0xff]   ;;  %v782_v17 = vld [vmem:[%s850_s27 + $0x38] sm:$0xff]   ;;  %v783_v21 = vld [vmem:[%s939_s0] sm:$0xff]  }
  0x18   : > { %720 = vmatprep.subr.bf16.mxu0 %v776_v8  ;;  %v879_v11 = vld [vmem:[#allocation2] sm:$0xff]  ;;  %v881_v12 = vld [vmem:[#allocation2 + $0x8] sm:$0xff]  ;;  %742 = vmatprep.mubr.msk.bf16.mxu1 %vm407_vm0, %v783_v21  ;;  %v787_v31 = vld [vmem:[%s855_s30 + $0x10] sm:$0xff]  }
  0x19   : > { %v269_v13 = vpack.c.bf16 %v881_v12, %v879_v11  ;;  %v267_v18 = vld [vmem:[#allocation2 + $0x10] sm:$0xff]  ;;  %v268_v19 = vld [vmem:[#allocation2 + $0x18] sm:$0xff]  ;;  %v785_v28 = vld [vmem:[%s855_s30] sm:$0xff]  }
  0x1a   : > { %v270_v20 = vpack.c.bf16 %v268_v19, %v267_v18  ;;  %v784_v29 = vld [vmem:[%s939_s0 + $0x8] sm:$0xff]   ;;  %v788_v32 = vld [vmem:[%s855_s30 + $0x18] sm:$0xff]   ;;  %v789_v33 = vld [vmem:[%s855_s30 + $0x20] sm:$0xff]  }
  0x1b   : > { %721 = vmatpush3.bf16.msra.mxu0 %v776_v8  ;;  %734 = vmatprep.mubr.bf16.mxu0 %v269_v13  ;;  %v786_v30 = vld [vmem:[%s855_s30 + $0x8] sm:$0xff]   ;;  %v791_v35 = vld [vmem:[%s855_s30 + $0x30] sm:$0xff]   ;;  %v792_v36 = vld [vmem:[%s855_s30 + $0x38] sm:$0xff]  }
  0x1c   : > { %722 = vmatprep.subr.bf16.mxu0 %v777_v9  ;;  %v790_v34 = vld [vmem:[%s855_s30 + $0x28] sm:$0xff]   ;;  %v668_v37 = vld [vmem:[%s238_s24] ss:$0 sm:$0xff]  ;;  %v477_v56 = vld [vmem:[%s944_s5 + $0x10] sm:$0xff] }
  0x1d   : > { %v475_v57 = vld [vmem:[%s944_s5] sm:$0xff]  ;;  %v478_v59 = vld [vmem:[%s944_s5 + $0x18] sm:$0xff]  ;;  %v476_v62 = vld [vmem:[%s944_s5 + $0x8] sm:$0xff] }
  0x1f   : > { %723 = vmatpush3.bf16.msra.mxu0 %v777_v9 }
  0x20   : > { %724 = vmatprep.subr.bf16.mxu0 %v778_v10 }
  0x23   : > { %725 = vmatpush3.bf16.msra.mxu0 %v778_v10 }
  0x24   : > { %726 = vmatprep.subr.bf16.mxu0 %v779_v14 }
  0x27   : > { %727 = vmatpush3.bf16.msra.mxu0 %v779_v14 }
  0x28   : > { %728 = vmatprep.subr.bf16.mxu0 %v780_v15 }
  0x2b   : > { %729 = vmatpush3.bf16.msra.mxu0 %v780_v15 }
  0x2c   : > { %730 = vmatprep.subr.bf16.mxu0 %v781_v16 }
  0x2f   : > { %731 = vmatpush3.bf16.msra.mxu0 %v781_v16 }
  0x30   : > { %732 = vmatprep.subr.bf16.mxu0 %v782_v17 }
  0x33   : > { %733 = vmatpush3.bf16.msra.mxu0 %v782_v17 }
  0x36   : > { %735 = vmatmul.mubr.bf16.vlgmr.msra.gmra.mrb[0].mxu0 %v270_v20 }
 0x109   : > { %v736_v22 = vpop.f32.mrb[0].mxu0 }
 0x10a   : > { %v369_v23 = vpop.f32.mrb[1].mxu0 }
 0x10b   : > { %v737_v24 = vpop.f32.mrb[2].mxu0 }
 0x10c   : > { %v389_v25 = vpack.c.bf16 %v737_v24, %v736_v22  ;;  %v372_v26 = vpop.f32.mrb[3].mxu0 }
 0x10d   : > { %v388_v27 = vpack.c.bf16 %v372_v26, %v369_v23 }
 0x10f   : > { %738 = vmatprep.subr.bf16.mxu1 %v388_v27 }
 0x110   : > { %739 = vmatpush3.bf16.msra.mxu1 %v388_v27 }
 0x111   : > { %740 = vmatprep.subr.bf16.mxu1 %v389_v25 }
 0x114   : > { %741 = vmatpush3.bf16.msra.mxu1 %v389_v25 }
 0x115   : > { %746 = vmatprep.subr.bf16.mxu1 %v785_v28 }
 0x117   : > { %743 = vmatmul.mubr.msk.bf16.vlgmr.msra.gmra.mrb[0].mxu1 %vm407_vm0, %v784_v29 }
 0x118   : > { %747 = vmatpush3.bf16.msra.mxu1 %v785_v28 }
 0x119   : > { %748 = vmatprep.subr.bf16.mxu1 %v786_v30 }
 0x11c   : > { %749 = vmatpush3.bf16.msra.mxu1 %v786_v30 }
 0x11d   : > { %750 = vmatprep.subr.bf16.mxu1 %v787_v31 }
 0x120   : > { %751 = vmatpush3.bf16.msra.mxu1 %v787_v31 }
 0x121   : > { %752 = vmatprep.subr.bf16.mxu1 %v788_v32 }
 0x124   : > { %753 = vmatpush3.bf16.msra.mxu1 %v788_v32 }
 0x125   : > { %754 = vmatprep.subr.bf16.mxu1 %v789_v33 }
 0x128   : > { %755 = vmatpush3.bf16.msra.mxu1 %v789_v33 }
 0x129   : > { %756 = vmatprep.subr.bf16.mxu1 %v790_v34 }
 0x12c   : > { %757 = vmatpush3.bf16.msra.mxu1 %v790_v34 }
 0x12d   : > { %758 = vmatprep.subr.bf16.mxu1 %v791_v35 }
 0x130   : > { %759 = vmatpush3.bf16.msra.mxu1 %v791_v35 }
 0x131   : > { %760 = vmatprep.subr.bf16.mxu1 %v792_v36 }
 0x134   : > { %761 = vmatpush3.bf16.msra.mxu1 %v792_v36 }
 0x1ea   : > { %v744_v38 = vpop.f32.mrb[0].mxu1 }
 0x1eb   : > { %v457_v39 = vadd.f32 %v744_v38, %v668_v37  ;;  %v448_v40 = vpop.f32.mrb[1].mxu1 }
 0x1ec   : > { %v449_v41 = vadd.f32 %v668_v37, %v448_v40  ;;  %v745_v42 = vpop.f32.mrb[2].mxu1 }
 0x1ed   : > { %v465_v43 = vmax.f32 %v457_v39, 0.0  ;;  %v460_v44 = vadd.f32 %v745_v42, %v668_v37  ;;  %v451_v45 = vpop.f32.mrb[3].mxu1 }
 0x1ee   : > { %v463_v46 = vmax.f32 %v449_v41, 0.0  ;;  %v452_v47 = vadd.f32 %v668_v37, %v451_v45 }
 0x1ef   : > { %v469_v48 = vadd.f32 %v465_v43, %v267_v18  ;;  %v466_v49 = vmax.f32 %v460_v44, 0.0 }
 0x1f0   : > { %v467_v50 = vadd.f32 %v463_v46, %v879_v11  ;;  %v464_v51 = vmax.f32 %v452_v47, 0.0 }
 0x1f1   : > { %473 = vst [vmem:[#allocation2 + $0x10] sm:$0xff] %v469_v48  ;;  %v470_v52 = vadd.f32 %v466_v49, %v268_v19 }
 0x1f2   : > { %471 = vst [vmem:[#allocation2] sm:$0xff] %v467_v50  ;;  %v468_v53 = vadd.f32 %v464_v51, %v881_v12 }
 0x1f3   : > { %474 = vst [vmem:[#allocation2 + $0x18] sm:$0xff] %v470_v52  ;;  %v480_v54 = vpack.c.bf16 %v470_v52, %v469_v48 }
 0x1f4   : > { %472 = vst [vmem:[#allocation2 + $0x8] sm:$0xff] %v468_v53  ;;  %v479_v55 = vpack.c.bf16 %v468_v53, %v467_v50 }
 0x1f6   : > { %762 = vmatprep.mubr.bf16.mxu1 %v479_v55 }
 0x1f7   : > { %763 = vmatmul.mubr.bf16.vlgmr.msra.gmra.mrb[4].mxu1 %v480_v54 }
 0x2ca   : > { %v764_v58 = vpop.f32.mrb[4].mxu1 }
 0x2cb   : > { %v596_v60 = vadd.f32 %v764_v58, %v477_v56  ;;  %v579_v61 = vpop.f32.mrb[5].mxu1 }
 0x2cc   : > { %v594_v63 = vadd.f32 %v579_v61, %v475_v57  ;;  %v765_v0 = vpop.f32.mrb[6].mxu1 }
 0x2cd   : > { %600 = vst [vmem:[%s944_s5 + $0x10] sm:$0xff] %v596_v60  ;;  %v597_v1 = vadd.f32 %v765_v0, %v478_v59  ;;  %v582_v2 = vpop.f32.mrb[7].mxu1 }
 0x2ce   : > { %598 = vst [vmem:[%s944_s5] sm:$0xff] %v594_v63  ;;  %v595_v3 = vadd.f32 %v582_v2, %v476_v62 }
 0x2cf   : > { %601 = vst [vmem:[%s944_s5 + $0x18] sm:$0xff] %v597_v1 }
 0x2d0   : > { %599 = vst [vmem:[%s944_s5 + $0x8] sm:$0xff] %v595_v3 }
 0x2d1 PF: > { %s15_s18 = sadd.s32 1, %s799_s18  }
 0x2d2   : > { %p12_p5 = scmp.ge.s32.totalorder %s15_s18, 5  }
 0x2d4   :  { %14 = sbr.rel (!%p12_p5) target bundleno = 1 (0x1), region = 76 }

</bundles_post_ra>
